<compile_context>
chip_gen: v5e
topology: v5e:2x2
jax: 0.10.0
libtpu: 0.0.40
codegen_flags: <defaults>
</compile_context>

<pallas_src>
import math
import numpy as np
import jax
import jax.numpy as jnp
from jax.experimental import pallas as pl
from jax.experimental.pallas import tpu as pltpu


# ---------------------------------------------------------------------------
# Shape-only helper matrices (plain numpy, exact PyTorch semantics)
# ---------------------------------------------------------------------------
def _adaptive_avg_pool_matrix(L, p):
    """(p, L) matrix A with A @ signal == nn.AdaptiveAvgPool1d(p)."""
    A = np.zeros((p, L), dtype=np.float64)
    for i in range(p):
        start = int(np.floor(i * L / p))
        end = int(np.ceil((i + 1) * L / p))
        A[i, start:end] = 1.0 / (end - start)
    return A


def _bilinear_upsample_matrix(p, L):
    """(L, p) matrix U replicating F.interpolate(mode='bilinear',
    align_corners=False) along one dimension (p -> L)."""
    U = np.zeros((L, p), dtype=np.float64)
    scale = p / L
    for y in range(L):
        src = (y + 0.5) * scale - 0.5
        if src < 0.0:                      # PyTorch clamps negative src to 0
            src = 0.0
        i0 = min(int(np.floor(src)), p - 1)
        i1 = min(i0 + 1, p - 1)
        w1 = src - i0
        U[y, i0] += 1.0 - w1
        U[y, i1] += w1
    return U


def _round_up(x, m):
    return ((x + m - 1) // m) * m


def _build_constants(H, W, HWp, pool_sizes, params, eps):
    """Stacked, branch-fused constant operands (spatial axis padded to HWp).

    Returns:
      m_pool_t: (HWp, PP)       bf16  stacked pooling matrices (zero-padded tail)
      m_up_t:   (PP, HWp)       bf16  stacked bilinear upsample matrices
      w_all:    (B*C_out, C_in) f32   BN-folded 1x1-conv weights (all branches)
      b_all:    (B*C_out, 1)    f32   BN-folded bias
      mask:     (B*C_out, PP)   f32   block-diagonal branch mask
    """
    HW = H * W
    pp_raw = sum(p * p for p in pool_sizes)
    PP = _round_up(pp_raw, 8)
    c_out = params[0]["w"].shape[0]
    c4 = len(pool_sizes) * c_out

    m_pool_t = np.zeros((HWp, PP), dtype=np.float64)
    m_up_t = np.zeros((PP, HWp), dtype=np.float64)
    mask = np.zeros((c4, PP), dtype=np.float32)
    w_blocks, b_blocks = [], []

    off = 0
    for b, (p, prm) in enumerate(zip(pool_sizes, params)):
        ph = _adaptive_avg_pool_matrix(H, p)
        pw = _adaptive_avg_pool_matrix(W, p)
        m_pool_t[:HW, off:off + p * p] = np.kron(ph, pw).T      # (HW, p^2)

        uh = _bilinear_upsample_matrix(p, H)
        uw = _bilinear_upsample_matrix(p, W)
        m_up_t[off:off + p * p, :HW] = np.kron(uh, uw).T        # (p^2, HW)

        mask[b * c_out:(b + 1) * c_out, off:off + p * p] = 1.0

        scale = prm["gamma"] / jnp.sqrt(prm["var"] + eps)        # (C_out,)
        w_blocks.append(prm["w"] * scale[:, None])               # (C_out, C_in)
        b_blocks.append(prm["beta"] - prm["mean"] * scale)       # (C_out,)
        off += p * p

    m_pool_t = jnp.asarray(m_pool_t.astype(np.float32), jnp.bfloat16)
    m_up_t = jnp.asarray(m_up_t.astype(np.float32), jnp.bfloat16)
    mask = jnp.asarray(mask, jnp.float32)
    w_all = jnp.concatenate(w_blocks, axis=0).astype(jnp.float32)
    b_all = jnp.concatenate(b_blocks, axis=0)[:, None].astype(jnp.float32)
    return m_pool_t, m_up_t, w_all, b_all, mask


# ---------------------------------------------------------------------------
# Kernel A: stacked adaptive-avg-pool (HW reduction) + fused 1x1 conv/BN/ReLU,
#           optionally writing the identity channels into the output slab
# ---------------------------------------------------------------------------
def _make_pool_conv_kernel(write_identity):
    def kernel(x_ref, mp_ref, w_ref, b_ref, mask_ref, *refs):
        # x_ref   : (C_in, hw_t)  one spatial tile of one batch element
        # mp_ref  : (hw_t, PP)    bf16  stacked pooling matrix tile
        # w_ref   : (C4, C_in)    f32   folded conv/BN weight (all branches)
        # b_ref   : (C4, 1)       f32   folded BN bias
        # mask_ref: (C4, PP)      f32   block-diagonal branch mask
        # [id_ref]: (C_in, hw_t)        identity rows of the final slab
        # y_ref   : (C4, PP)      f32   masked ReLU'd branch features
        # acc_ref : (C_in, PP)    f32   pooled accumulator (scratch)
        if write_identity:
            id_ref, y_ref, acc_ref = refs
        else:
            y_ref, acc_ref = refs
        t = pl.program_id(1)

        @pl.when(t == 0)
        def _():
            acc_ref[...] = jnp.zeros_like(acc_ref)

        x = x_ref[...]
        if write_identity:
            id_ref[...] = x.astype(id_ref.dtype)        # lane-dense identity copy
        acc_ref[...] += jnp.dot(x.astype(jnp.bfloat16), mp_ref[...],
                                preferred_element_type=jnp.float32)

        @pl.when(t == pl.num_programs(1) - 1)
        def _():
            y = jnp.dot(w_ref[...], acc_ref[...],        # f32 conv contraction
                        preferred_element_type=jnp.float32)
            y = jnp.maximum(y + b_ref[...], 0.0) * mask_ref[...]
            y_ref[...] = y.astype(y_ref.dtype)

    return kernel


# ---------------------------------------------------------------------------
# Kernel B (fused path): bilinear upsample written into rows [C_in, C_total)
#                        of the aliased output slab (identity rows untouched)
# ---------------------------------------------------------------------------
def _upsample_offset_kernel(slab_hbm_ref, y_ref, mu_ref, o_ref):
    # slab_hbm_ref: aliased final slab (identity rows already written by A)
    # y_ref : (cb, PP)       f32   branch-feature channel block
    # mu_ref: (PP, hw_t)     bf16  stacked upsample matrix tile
    # o_ref : (cb, hw_t)           output channel block at offset C_in + c*cb
    del slab_hbm_ref
    up = jnp.dot(y_ref[...].astype(jnp.bfloat16), mu_ref[...],
                 preferred_element_type=jnp.float32)
    o_ref[...] = up.astype(o_ref.dtype)


# ---------------------------------------------------------------------------
# Kernel B (fallback path): identity copy + upsample into the full slab
# ---------------------------------------------------------------------------
def _upsample_concat_kernel(x_ref, y_ref, mu_ref, o_ref):
    c_in = x_ref.shape[0]
    o_ref[0:c_in, :] = x_ref[...].astype(o_ref.dtype)
    up = jnp.dot(y_ref[...].astype(jnp.bfloat16), mu_ref[...],
                 preferred_element_type=jnp.float32)
    o_ref[c_in:, :] = up.astype(o_ref.dtype)


# ---------------------------------------------------------------------------
# VMEM budgeting + spatial-tile selection (generation aware)
# ---------------------------------------------------------------------------
def _vmem_ceiling():
    cap = 64 << 20                     # conservative default (v7x physical)
    try:
        cap = int(getattr(pltpu.get_tpu_info(), "vmem_capacity_bytes", cap))
    except Exception:
        pass
    # Leave headroom for compiler-internal scratch / semaphores.
    return cap - max(16 << 20, cap // 5)


def _select_hw_tile(HWp, C_in, C4, C_total, PP, x_bytes, out_bytes, fused,
                    ceiling, max_tile):
    f32, bf16 = 4, 2
    # Constant-index (single-buffered) VMEM residents of kernel A.
    a_fixed = (C4 * C_in * f32 + C4 * f32 + C4 * PP * f32   # w, b, mask
               + 2 * C4 * PP * f32                           # y out (tiny)
               + C_in * PP * f32)                            # accumulator
    hw_t = max(128, (min(HWp, max_tile) // 128) * 128)
    while hw_t >= 128:
        if HWp % hw_t == 0:
            a_db = C_in * hw_t * x_bytes + hw_t * PP * bf16
            if fused:
                a_db += C_in * hw_t * out_bytes              # identity rows out
                b_db = C4 * PP * f32 + PP * hw_t * bf16 + C4 * hw_t * out_bytes
            else:
                b_db = (C_in * hw_t * x_bytes + C4 * PP * f32
                        + PP * hw_t * bf16 + C_total * hw_t * out_bytes)
            a_need = 2 * a_db + a_fixed + (2 << 20)
            b_need = 2 * b_db + (2 << 20)
            if max(a_need, b_need) <= ceiling:
                return hw_t
        hw_t -= 128
    raise ValueError(
        "PyramidPoolingModule kernel: no spatial tile fits the VMEM budget "
        f"({ceiling >> 20} MiB) for C_in={C_in}, C4={C4}.")


# ---------------------------------------------------------------------------
# Wrapper
# ---------------------------------------------------------------------------
def pyramid_pooling_forward(x_nchw, params, pool_sizes, eps=1e-5,
                            hw_tile=None, out_dtype=None):
    """x_nchw: (N, C_in, H, W) -> (N, C_in + len(pool_sizes)*C_out, H, W)."""
    N, C_in, H, W = x_nchw.shape
    HW = H * W
    HWp = _round_up(HW, 128)                 # lane-aligned, pipelined tiles
    c_out = params[0]["w"].shape[0]
    C4 = len(pool_sizes) * c_out
    C_total = C_in + C4
    out_dtype = x_nchw.dtype if out_dtype is None else out_dtype

    m_pool_t, m_up_t, w_all, b_all, mask = _build_constants(
        H, W, HWp, pool_sizes, params, eps)
    PP = m_pool_t.shape[1]

    x_flat = x_nchw.reshape(N, C_in, HW)     # free reshape, stays NCHW
    if HWp != HW:
        x_flat = jnp.pad(x_flat, ((0, 0), (0, 0), (0, HWp - HW)))

    # Fused path writes the identity rows from kernel A and channel-offset
    # blocks from kernel B; both need 8-aligned channel blocks.
    fused = (C_in % 8 == 0) and (C4 % 8 == 0)
    ceiling = _vmem_ceiling()
    hw_t = _select_hw_tile(HWp, C_in, C4, C_total, PP,
                           x_flat.dtype.itemsize,
                           jnp.dtype(out_dtype).itemsize,
                           fused, ceiling, hw_tile or 2048)
    T = HWp // hw_t

    cparams_a = pltpu.CompilerParams(
        dimension_semantics=("parallel", "arbitrary"),
        vmem_limit_bytes=int(ceiling))

    a_in_specs = [
        pl.BlockSpec((None, C_in, hw_t), lambda n, t: (n, 0, t)),
        pl.BlockSpec((hw_t, PP), lambda n, t: (t, 0)),
        pl.BlockSpec((C4, C_in), lambda n, t: (0, 0)),
        pl.BlockSpec((C4, 1), lambda n, t: (0, 0)),
        pl.BlockSpec((C4, PP), lambda n, t: (0, 0)),
    ]
    y_shape = jax.ShapeDtypeStruct((N, C4, PP), jnp.float32)
    y_spec = pl.BlockSpec((None, C4, PP), lambda n, t: (n, 0, 0))
    a_scratch = [pltpu.VMEM((C_in, PP), jnp.float32)]
    slab_shape = jax.ShapeDtypeStruct((N, C_total, HWp), out_dtype)

    if fused:
        cb = math.gcd(C_in, C4)              # channel block (multiple of 8)
        CB = C4 // cb
        off_cb = C_in // cb                  # output channel-block offset

        slab, y = pl.pallas_call(
            _make_pool_conv_kernel(True),
            out_shape=(slab_shape, y_shape),
            grid=(N, T),
            in_specs=a_in_specs,
            out_specs=(
                pl.BlockSpec((None, C_in, hw_t), lambda n, t: (n, 0, t)),
                y_spec,
            ),
            scratch_shapes=a_scratch,
            compiler_params=cparams_a,
        )(x_flat, m_pool_t, w_all, b_all, mask)

        out_flat = pl.pallas_call(
            _upsample_offset_kernel,
            out_shape=slab_shape,
            grid=(N, CB, T),
            in_specs=[
                pl.BlockSpec(memory_space=pl.ANY),                 # aliased slab
                pl.BlockSpec((None, cb, PP), lambda n, c, t: (n, c, 0)),
                pl.BlockSpec((PP, hw_t), lambda n, c, t: (0, t)),
            ],
            out_specs=pl.BlockSpec((None, cb, hw_t),
                                   lambda n, c, t: (n, off_cb + c, t)),
            input_output_aliases={0: 0},
            compiler_params=pltpu.CompilerParams(
                dimension_semantics=("parallel", "parallel", "parallel"),
                vmem_limit_bytes=int(ceiling)),
        )(slab, y, m_up_t)
    else:
        # Fallback: identity rows cannot use an 8-aligned channel block, so
        # kernel B re-reads x and writes the full slab (extra C_in*HW read).
        y = pl.pallas_call(
            _make_pool_conv_kernel(False),
            out_shape=y_shape,
            grid=(N, T),
            in_specs=a_in_specs,
            out_specs=y_spec,
            scratch_shapes=a_scratch,
            compiler_params=cparams_a,
        )(x_flat, m_pool_t, w_all, b_all, mask)

        out_flat = pl.pallas_call(
            _upsample_concat_kernel,
            out_shape=slab_shape,
            grid=(N, T),
            in_specs=[
                pl.BlockSpec((None, C_in, hw_t), lambda n, t: (n, 0, t)),
                pl.BlockSpec((None, C4, PP), lambda n, t: (n, 0, 0)),
                pl.BlockSpec((PP, hw_t), lambda n, t: (0, t)),
            ],
            out_specs=pl.BlockSpec((None, C_total, hw_t), lambda n, t: (n, 0, t)),
            compiler_params=pltpu.CompilerParams(
                dimension_semantics=("parallel", "parallel"),
                vmem_limit_bytes=int(ceiling)),
        )(x_flat, y, m_up_t)

    if HWp != HW:
        out_flat = out_flat[:, :, :HW]
    return out_flat.reshape(N, C_total, H, W)


# ---------------------------------------------------------------------------
# Pure-JAX f32 reference (same math, no Pallas) — plumbing sanity check
# ---------------------------------------------------------------------------
def _reference_forward(x_nchw, params, pool_sizes, eps=1e-5):
    N, C_in, H, W = x_nchw.shape
    HW = H * W
    x_flat = x_nchw.reshape(N, C_in, HW)
    feats = [x_nchw]
    for p, prm in zip(pool_sizes, params):
        mp = jnp.asarray(np.kron(_adaptive_avg_pool_matrix(H, p),
                                 _adaptive_avg_pool_matrix(W, p)).astype(np.float32))
        mu = jnp.asarray(np.kron(_bilinear_upsample_matrix(p, H),
                                 _bilinear_upsample_matrix(p, W)).astype(np.float32))
        pooled = jnp.einsum("ncs,ps->ncp", x_flat, mp)
        scale = prm["gamma"] / jnp.sqrt(prm["var"] + eps)
        w_eff = prm["w"] * scale[:, None]
        b_eff = prm["beta"] - prm["mean"] * scale
        y = jnp.maximum(jnp.einsum("oc,ncp->nop", w_eff, pooled)
                        + b_eff[None, :, None], 0.0)
        up = jnp.einsum("sp,nop->nos", mu, y)
        feats.append(up.reshape(N, -1, H, W))
    return jnp.concatenate(feats, axis=1)


def init_ppm_params(key, in_channels, pool_sizes, out_channels):
    params = []
    for _ in pool_sizes:
        kw, kg, kb, km, kv, key = jax.random.split(key, 6)
        params.append(dict(
            w=0.1 * jax.random.normal(kw, (out_channels, in_channels), jnp.float32),
            gamma=1.0 + 0.1 * jax.random.normal(kg, (out_channels,), jnp.float32),
            beta=0.1 * jax.random.normal(kb, (out_channels,), jnp.float32),
            mean=0.1 * jax.random.normal(km, (out_channels,), jnp.float32),
            var=jnp.abs(jax.random.normal(kv, (out_channels,), jnp.float32)) + 0.5,
        ))
    return params


if __name__ == "__main__":
    key = jax.random.PRNGKey(0)
    pool_sizes = (1, 2, 3, 6)

    # ---- test 1: fused path (C_in, C4 multiples of 8), 128-aligned HW ----
    N, C_in, H, W, C_out = 2, 8, 16, 16, 8
    kx, kp, key = jax.random.split(key, 3)
    x = jax.random.normal(kx, (N, C_in, H, W), dtype=jnp.float32)
    params = init_ppm_params(kp, C_in, pool_sizes, C_out)

    fwd = jax.jit(lambda a, p: pyramid_pooling_forward(a, p, pool_sizes))
    out = jax.block_until_ready(fwd(x, params))
    assert out.shape == (N, C_in + len(pool_sizes) * C_out, H, W), out.shape
    assert out.dtype == jnp.float32
    ref = jax.block_until_ready(_reference_forward(x, params, pool_sizes))
    err = float(jnp.max(jnp.abs(out - ref)))
    assert err < 5e-2, f"fused-path max abs err {err}"

    # ---- test 2: fallback path (C_in not multiple of 8) + ragged HW (15x15) ----
    N2, C_in2, H2, W2, C_out2 = 1, 4, 15, 15, 8
    kx2, kp2, key = jax.random.split(key, 3)
    x2 = jax.random.normal(kx2, (N2, C_in2, H2, W2), dtype=jnp.float32)
    params2 = init_ppm_params(kp2, C_in2, pool_sizes, C_out2)

    fwd2 = jax.jit(lambda a, p: pyramid_pooling_forward(a, p, pool_sizes))
    out2 = jax.block_until_ready(fwd2(x2, params2))
    assert out2.shape == (N2, C_in2 + len(pool_sizes) * C_out2, H2, W2), out2.shape
    ref2 = jax.block_until_ready(_reference_forward(x2, params2, pool_sizes))
    err2 = float(jnp.max(jnp.abs(out2 - ref2)))
    assert err2 < 5e-2, f"fallback-path max abs err {err2}"

    print("KERNEL_OK")
</pallas_src>

<mosaic_0001>
module attributes {stable_mosaic.version = 11 : i64} {
  func.func @_upsample_offset_kernel(%arg0: i32, %arg1: i32, %arg2: i32, %arg3: memref<2x40x256xf32, #tpu.memory_space<any>>, %arg4: memref<1x8x56xf32, #tpu.memory_space<vmem>>, %arg5: memref<56x256xbf16, #tpu.memory_space<vmem>>, %arg6: memref<1x8x256xf32, #tpu.memory_space<vmem>>) attributes {dimension_semantics = [#tpu.dimension_semantics<parallel>, #tpu.dimension_semantics<parallel>, #tpu.dimension_semantics<parallel>], iteration_bounds = array<i64: 2, 4, 1>, scalar_prefetch = 0 : i64, scratch_operands = 0 : i64, tpu.core_type = #tpu.core_type<tc>, window_params = [{}, {transform_indices = @transform_1, window_bounds = array<i64: 1, 8, 56>}, {transform_indices = @transform_2, window_bounds = array<i64: 56, 256>}, {transform_indices = @transform_3, window_bounds = array<i64: 1, 8, 256>}]} {
    %c0 = arith.constant 0 : index
    %c0_0 = arith.constant 0 : index
    %c0_1 = arith.constant 0 : index
    %0 = vector.load %arg4[%c0, %c0_0, %c0_1] : memref<1x8x56xf32, #tpu.memory_space<vmem>>, vector<1x8x56xf32>
    %1 = vector.shape_cast %0 : vector<1x8x56xf32> to vector<8x56xf32>
    %2 = arith.truncf %1 : vector<8x56xf32> to vector<8x56xbf16>
    %c0_2 = arith.constant 0 : index
    %c0_3 = arith.constant 0 : index
    %3 = vector.load %arg5[%c0_2, %c0_3] : memref<56x256xbf16, #tpu.memory_space<vmem>>, vector<56x256xbf16>
    %cst = arith.constant dense<0.000000e+00> : vector<8x256xf32>
    %4 = tpu.matmul %2, %3, %cst {dimension_numbers = #tpu.dot_dimension_numbers<[1], [0], [0], [1], [0, 0, 1, 1], [], []>} : vector<8x56xbf16>, vector<56x256xbf16>, vector<8x256xf32> -> vector<8x256xf32>
    %c0_4 = arith.constant 0 : index
    %c0_5 = arith.constant 0 : index
    %c0_6 = arith.constant 0 : index
    %5 = vector.load %arg6[%c0_4, %c0_5, %c0_6] : memref<1x8x256xf32, #tpu.memory_space<vmem>>, vector<1x8x256xf32>
    %6 = vector.shape_cast %5 : vector<1x8x256xf32> to vector<8x256xf32>
    %7 = vector.shape_cast %4 : vector<8x256xf32> to vector<1x8x256xf32>
    tpu.vector_store %arg6[%c0_4, %c0_5, %c0_6], %7 {strides = array<i32>} : memref<1x8x256xf32, #tpu.memory_space<vmem>>, vector<1x8x256xf32>,
    return
  }
  func.func @transform_1(%arg0: i32, %arg1: i32, %arg2: i32) -> (i32, i32, i32) {
    %c0_i32 = arith.constant 0 : i32
    %c0_i32_0 = arith.constant 0 : i32
    return %arg0, %arg1, %c0_i32 : i32, i32, i32
  }
  func.func @transform_2(%arg0: i32, %arg1: i32, %arg2: i32) -> (i32, i32) {
    %c0_i32 = arith.constant 0 : i32
    %c0_i32_0 = arith.constant 0 : i32
    return %c0_i32, %arg2 : i32, i32
  }
  func.func @transform_3(%arg0: i32, %arg1: i32, %arg2: i32) -> (i32, i32, i32) {
    %c1_i32 = arith.constant 1 : i32
    %0 = arith.addi %c1_i32, %arg1 : i32
    %c0_i32 = arith.constant 0 : i32
    return %arg0, %0, %arg2 : i32, i32, i32
  }
}

module attributes {stable_mosaic.version = 11 : i64} {
  func.func @kernel(%arg0: i32, %arg1: i32, %arg2: memref<1x8x256xf32, #tpu.memory_space<vmem>>, %arg3: memref<256x56xbf16, #tpu.memory_space<vmem>>, %arg4: memref<32x8xf32, #tpu.memory_space<vmem>>, %arg5: memref<32x1xf32, #tpu.memory_space<vmem>>, %arg6: memref<32x56xf32, #tpu.memory_space<vmem>>, %arg7: memref<1x8x256xf32, #tpu.memory_space<vmem>>, %arg8: memref<1x32x56xf32, #tpu.memory_space<vmem>>, %arg9: memref<8x56xf32, #tpu.memory_space<vmem>>) attributes {dimension_semantics = [#tpu.dimension_semantics<parallel>, #tpu.dimension_semantics<arbitrary>], iteration_bounds = array<i64: 2, 1>, scalar_prefetch = 0 : i64, scratch_operands = 1 : i64, tpu.core_type = #tpu.core_type<tc>, window_params = [{transform_indices = @transform_0, window_bounds = array<i64: 1, 8, 256>}, {transform_indices = @transform_1, window_bounds = array<i64: 256, 56>}, {pipeline_mode = #tpu.pipeline_mode<synchronous>, transform_indices = @transform_2, window_bounds = array<i64: 32, 8>}, {pipeline_mode = #tpu.pipeline_mode<synchronous>, transform_indices = @transform_3, window_bounds = array<i64: 32, 1>}, {pipeline_mode = #tpu.pipeline_mode<synchronous>, transform_indices = @transform_4, window_bounds = array<i64: 32, 56>}, {transform_indices = @transform_5, window_bounds = array<i64: 1, 8, 256>}, {transform_indices = @transform_6, window_bounds = array<i64: 1, 32, 56>}]} {
    %c0_i32 = arith.constant 0 : i32
    %0 = arith.cmpi eq, %arg1, %c0_i32 : i32
    %1 = arith.extui %0 : i1 to i32
    %c0_i32_0 = arith.constant 0 : i32
    %2 = arith.cmpi ne, %1, %c0_i32_0 : i32
    scf.if %2 {
      %cst_14 = arith.constant 0.000000e+00 : f32
      %17 = vector.broadcast %cst_14 : f32 to vector<8x56xf32>
      %c0_15 = arith.constant 0 : index
      %c0_16 = arith.constant 0 : index
      %18 = vector.load %arg9[%c0_15, %c0_16] : memref<8x56xf32, #tpu.memory_space<vmem>>, vector<8x56xf32>
      tpu.vector_store %arg9[%c0_15, %c0_16], %17 {strides = array<i32>} : memref<8x56xf32, #tpu.memory_space<vmem>>, vector<8x56xf32>,
    } else {
    }
    %c0 = arith.constant 0 : index
    %c0_1 = arith.constant 0 : index
    %c0_2 = arith.constant 0 : index
    %3 = vector.load %arg2[%c0, %c0_1, %c0_2] : memref<1x8x256xf32, #tpu.memory_space<vmem>>, vector<1x8x256xf32>
    %4 = vector.shape_cast %3 : vector<1x8x256xf32> to vector<8x256xf32>
    %c0_3 = arith.constant 0 : index
    %c0_4 = arith.constant 0 : index
    %c0_5 = arith.constant 0 : index
    %5 = vector.load %arg7[%c0_3, %c0_4, %c0_5] : memref<1x8x256xf32, #tpu.memory_space<vmem>>, vector<1x8x256xf32>
    %6 = vector.shape_cast %5 : vector<1x8x256xf32> to vector<8x256xf32>
    %7 = vector.shape_cast %4 : vector<8x256xf32> to vector<1x8x256xf32>
    tpu.vector_store %arg7[%c0_3, %c0_4, %c0_5], %7 {strides = array<i32>} : memref<1x8x256xf32, #tpu.memory_space<vmem>>, vector<1x8x256xf32>,
    %c0_6 = arith.constant 0 : index
    %c0_7 = arith.constant 0 : index
    %8 = vector.load %arg9[%c0_6, %c0_7] : memref<8x56xf32, #tpu.memory_space<vmem>>, vector<8x56xf32>
    %9 = arith.truncf %4 : vector<8x256xf32> to vector<8x256xbf16>
    %c0_8 = arith.constant 0 : index
    %c0_9 = arith.constant 0 : index
    %10 = vector.load %arg3[%c0_8, %c0_9] : memref<256x56xbf16, #tpu.memory_space<vmem>>, vector<256x56xbf16>
    %cst = arith.constant dense<0.000000e+00> : vector<8x56xf32>
    %11 = tpu.matmul %9, %10, %cst {dimension_numbers = #tpu.dot_dimension_numbers<[1], [0], [0], [1], [0, 0, 1, 1], [], []>} : vector<8x256xbf16>, vector<256x56xbf16>, vector<8x56xf32> -> vector<8x56xf32>
    %12 = arith.addf %8, %11 : vector<8x56xf32>
    %c0_10 = arith.constant 0 : index
    %c0_11 = arith.constant 0 : index
    %13 = vector.load %arg9[%c0_10, %c0_11] : memref<8x56xf32, #tpu.memory_space<vmem>>, vector<8x56xf32>
    tpu.vector_store %arg9[%c0_10, %c0_11], %12 {strides = array<i32>} : memref<8x56xf32, #tpu.memory_space<vmem>>, vector<8x56xf32>,
    %c0_i32_12 = arith.constant 0 : i32
    %14 = arith.cmpi eq, %arg1, %c0_i32_12 : i32
    %15 = arith.extui %14 : i1 to i32
    %c0_i32_13 = arith.constant 0 : i32
    %16 = arith.cmpi ne, %15, %c0_i32_13 : i32
    scf.if %16 {
      %c0_14 = arith.constant 0 : index
      %c0_15 = arith.constant 0 : index
      %17 = vector.load %arg4[%c0_14, %c0_15] : memref<32x8xf32, #tpu.memory_space<vmem>>, vector<32x8xf32>
      %c0_16 = arith.constant 0 : index
      %c0_17 = arith.constant 0 : index
      %18 = vector.load %arg9[%c0_16, %c0_17] : memref<8x56xf32, #tpu.memory_space<vmem>>, vector<8x56xf32>
      %cst_18 = arith.constant dense<0.000000e+00> : vector<32x56xf32>
      %19 = tpu.matmul %17, %18, %cst_18 {dimension_numbers = #tpu.dot_dimension_numbers<[1], [0], [0], [1], [0, 0, 1, 1], [], []>} : vector<32x8xf32>, vector<8x56xf32>, vector<32x56xf32> -> vector<32x56xf32>
      %c0_19 = arith.constant 0 : index
      %c0_20 = arith.constant 0 : index
      %20 = vector.load %arg5[%c0_19, %c0_20] : memref<32x1xf32, #tpu.memory_space<vmem>>, vector<32x1xf32>
      %21 = vector.broadcast %20 : vector<32x1xf32> to vector<32x56xf32>
      %22 = arith.addf %19, %21 : vector<32x56xf32>
      %cst_21 = arith.constant 0.000000e+00 : f32
      %23 = vector.broadcast %cst_21 : f32 to vector<32x56xf32>
      %24 = arith.maximumf %22, %23 : vector<32x56xf32>
      %c0_22 = arith.constant 0 : index
      %c0_23 = arith.constant 0 : index
      %25 = vector.load %arg6[%c0_22, %c0_23] : memref<32x56xf32, #tpu.memory_space<vmem>>, vector<32x56xf32>
      %26 = arith.mulf %24, %25 : vector<32x56xf32>
      %c0_24 = arith.constant 0 : index
      %c0_25 = arith.constant 0 : index
      %c0_26 = arith.constant 0 : index
      %27 = vector.load %arg8[%c0_24, %c0_25, %c0_26] : memref<1x32x56xf32, #tpu.memory_space<vmem>>, vector<1x32x56xf32>
      %28 = vector.shape_cast %27 : vector<1x32x56xf32> to vector<32x56xf32>
      %29 = vector.shape_cast %26 : vector<32x56xf32> to vector<1x32x56xf32>
      tpu.vector_store %arg8[%c0_24, %c0_25, %c0_26], %29 {strides = array<i32>} : memref<1x32x56xf32, #tpu.memory_space<vmem>>, vector<1x32x56xf32>,
    } else {
    }
    return
  }
  func.func @transform_0(%arg0: i32, %arg1: i32) -> (i32, i32, i32) {
    %c0_i32 = arith.constant 0 : i32
    %c0_i32_0 = arith.constant 0 : i32
    return %arg0, %c0_i32, %arg1 : i32, i32, i32
  }
  func.func @transform_1(%arg0: i32, %arg1: i32) -> (i32, i32) {
    %c0_i32 = arith.constant 0 : i32
    %c0_i32_0 = arith.constant 0 : i32
    return %arg1, %c0_i32 : i32, i32
  }
  func.func @transform_2(%arg0: i32, %arg1: i32) -> (i32, i32) {
    %c0_i32 = arith.constant 0 : i32
    %c0_i32_0 = arith.constant 0 : i32
    %c0_i32_1 = arith.constant 0 : i32
    return %c0_i32, %c0_i32_0 : i32, i32
  }
  func.func @transform_3(%arg0: i32, %arg1: i32) -> (i32, i32) {
    %c0_i32 = arith.constant 0 : i32
    %c0_i32_0 = arith.constant 0 : i32
    %c0_i32_1 = arith.constant 0 : i32
    return %c0_i32, %c0_i32_0 : i32, i32
  }
  func.func @transform_4(%arg0: i32, %arg1: i32) -> (i32, i32) {
    %c0_i32 = arith.constant 0 : i32
    %c0_i32_0 = arith.constant 0 : i32
    %c0_i32_1 = arith.constant 0 : i32
    return %c0_i32, %c0_i32_0 : i32, i32
  }
  func.func @transform_5(%arg0: i32, %arg1: i32) -> (i32, i32, i32) {
    %c0_i32 = arith.constant 0 : i32
    %c0_i32_0 = arith.constant 0 : i32
    return %arg0, %c0_i32, %arg1 : i32, i32, i32
  }
  func.func @transform_6(%arg0: i32, %arg1: i32) -> (i32, i32, i32) {
    %c0_i32 = arith.constant 0 : i32
    %c0_i32_0 = arith.constant 0 : i32
    %c0_i32_1 = arith.constant 0 : i32
    return %arg0, %c0_i32, %c0_i32_0 : i32, i32, i32
  }
}

</mosaic_0001>

<bundles_post_ra>
// kernel: _lambda_.3
= control target key start
LH: loop header
LB: loop body
LE: loop exit
PB: predicated region body
PF: predicated region fallthrough
CT: control target
= control target key end

     0   :  { %s579_s12 = smov 0   ;;  %s581_s13 = smov 0   ;;  %s682_s0 = inlined_call_operand.vmem [shape: f32[2,40,256], index: 0, kind: input, shape index: {}, may-alias: {0,3}]   ;;  %s683_s1 = inlined_call_operand.vmem [shape: f32[2,32,56], index: 1, kind: input, shape index: {}]   ;;  %s684_s2 = inlined_call_operand.vmem [shape: bf16[56,256], index: 2, kind: input, shape index: {}]   ;;  %s685_s3 = inlined_call_operand.vmem [shape: f32[2,40,256], index: 3, kind: output, shape index: {}, may-alias: {0,3}]  }
   0x1   :  { %s583_s14 = smov 0   ;;  %s585_s15 = smov 0  }
   0x2   :  { %s587_s16 = smov 0  }
   0x3 LB: > { %s28_s0 = sadd.s32 1, %s549_s14  ;;  %s32_s17 = sadd.s32 1, %s553_s15  ;;  %s557_s16 = sphi %s587_s16, %s13_s16   ;;  %s553_s15 = sphi %s585_s15, %s689_s15   ;;  %s549_s14 = sphi %s583_s14, %s688_s14   ;;  %s545_s13 = sphi %s581_s13, %s687_s13   ;;  %s541_s12 = sphi %s579_s12, %s686_s12  }
   0x4   : > { %p30_p0 = scmp.ge.s32.totalorder %s28_s0, 4  ;;  %p439_p1 = scmp.ge.s32.totalorder %s557_s16, 1 }
   0x5   : > { %p154_p2 = scmp.lt.s32.totalorder %s557_s16, 9 }
   0x6   : > { %s691_s0 = smov (%p30_p0, %s28_s0), 0  ;;  %s693_s17 = smov (!%p30_p0, %s32_s17), %s553_s15 }
   0x7   : > { %p155_p3 = pnand %p439_p1, %p154_p2  ;;  %p34_p4 = scmp.ge.s32.totalorder %s693_s17, 2 }
   0x8   : > { %p193_p5 = scmp.lt.s32.totalorder (!%p155_p3), %s545_s13, 1  ;;  %p195_p6 = scmp.lt.s32.totalorder (!%p155_p3), %s541_s12, 3 }
   0x9   : > { %s695_s17 = smov (%p34_p4, %s693_s17), 0  ;;  %158 = sbr.rel (%p155_p3) target bundleno = 169 (0xa9), region = 28 }
   0xa   : > { %s207_s30 = sadd.s32 (!%p155_p3), 1, %s541_s12 }
   0xb   : > { %p211_p7 = scmp.lt.s32.totalorder (!%p155_p3), %s207_s30, 4 }
   0xe   : > { %v232_v0 = vld [vmem:[%s684_s2 + $0x30] sm:$0xff]  ;;  %vm272_vm0 = vcmask 1043456   ;;  %v462_v3 = vld [vmem:[%s684_s2 + $0x20] sm:$0xf]  ;;  %v477_v6 = vld [vmem:[%s684_s2 + $0x24] sm:$0xf0] }
   0xf   : > { %v252_v1 = vunpack.c.l.b16 %v232_v0  ;;  %v253_v2 = vunpack.c.h.b16 %v232_v0  ;;  %v476_v7 = vld [vmem:[%s684_s2 + $0x24] sm:$0xf]  ;;  %v464_v8 = vld [vmem:[%s684_s2 + $0x28] sm:$0xf0]  ;;  %v463_v11 = vor.u32 %v477_v6, %v462_v3  ;;  %v454_v13 = vld [vmem:[%s684_s2 + $0x10] sm:$0xf] }
  0x10   : > { %v467_v12 = vor.u32 %v476_v7, %v464_v8  ;;  %v475_v14 = vld [vmem:[%s684_s2 + $0x14] sm:$0xf0]  ;;  %s697_s13 = smov (!%p193_p5, %s545_s13), 1  ;;  %v474_v15 = vld [vmem:[%s684_s2 + $0x14] sm:$0xf]  ;;  %vm268_vm1 = vcmask 457728  }
  0x11   : > { %v260_v4 = vpack.c.b16 %v252_v1, %v252_v1  ;;  %v261_v5 = vpack.c.b16 %v253_v2, %v253_v2  ;;  %v456_v16 = vld [vmem:[%s684_s2 + $0x18] sm:$0xf0]  ;;  %s196_s9 = scalar_select %p195_p6, %s541_s12, 3  ;;  %v455_v17 = vor.u32 %v475_v14, %v454_v13  ;;  %v446_v19 = vld [vmem:[%s684_s2] sm:$0xf] }
  0x12   : > { %s440_s10 = sshll.u32 %s697_s13, 2  ;;  %v459_v18 = vor.u32 %v474_v15, %v456_v16  ;;  %v473_v20 = vld [vmem:[%s684_s2 + $0x4] sm:$0xf0]  ;;  %v472_v21 = vld [vmem:[%s684_s2 + $0x4] sm:$0xf]  ;;  %s699_s30 = smov (!%p211_p7, %s207_s30), 4 }
  0x13   : > { %v274_v9 = vsel %vm272_vm0, %v260_v4, 0  ;;  %v277_v10 = vsel %vm272_vm0, %v261_v5, 0  ;;  %s198_s11 = sadd.s32 %s440_s10, %s196_s9  ;;  %v448_v22 = vld [vmem:[%s684_s2 + $0x8] sm:$0xf0]  ;;  %v447_v23 = vor.u32 %v473_v20, %v446_v19  ;;  %s478_s4 = smul.u32 10, %s697_s13 }
  0x14   : > { %283 = vmatpush.bf16.msra.mxu0 %v274_v9  ;;  %296 = vmatpush.bf16.msra.mxu1 %v277_v10  ;;  %s441_s20 = sshll.u32 %s198_s11, 3  ;;  %v451_v24 = vor.u32 %v472_v21, %v448_v22  ;;  %s442_s5 = sshll.u32 %s699_s30, 1 }
  0x15   : > { %s200_s29 = scalar_lea.vmem %s683_s1, %s441_s20  ;;  %s218_s6 = sadd.s32 %s478_s4, %s442_s5 }
  0x16   : > { %v224_v25 = vld [vmem:[%s200_s29] sm:$0xff]  ;;  %s443_s7 = sshll.u32 %s218_s6, 3 }
  0x17   : > { %v225_v26 = vpack.c.bf16 %v224_v25, %v224_v25  ;;  %s220_s10 = scalar_lea.vmem %s685_s3, %s443_s7 }
  0x18   : > { %284 = vmatpush.bf16.msra.mxu0 %v463_v11  ;;  %297 = vmatpush.bf16.msra.mxu1 %v467_v12 }
  0x1c   : > { %285 = vmatpush.bf16.msra.mxu0 %v455_v17  ;;  %298 = vmatpush.bf16.msra.mxu1 %v459_v18 }
  0x20   : > { %286 = vmatpush.bf16.msra.mxu0 %v447_v23  ;;  %299 = vmatpush.bf16.msra.mxu1 %v451_v24 }
  0x23   : > { %468 = vmatmul.msk.bf16.vlgmr.msra.gmra.mxu0 %vm268_vm1, %v225_v26  ;;  %469 = vmatmul.msk.bf16.vlgmr.msra.gmra.mxu1 %vm268_vm1, %v225_v26 }
  0xa0   : > { %v288_v27 = vpop.f32.mrf.mxu0  ;;  %v301_v28 = vpop.f32.mrf.mxu1 }
  0xa1   : > { %305 = vst [vmem:[%s220_s10] sm:$0xff] %v288_v27 }
  0xa2   : > { %306 = vst [vmem:[%s220_s10 + $0x8] sm:$0xff] %v301_v28 }
  0xa8   : > { %v290_v29 = vpop.f32.mrf.mxu0  ;;  %v303_v30 = vpop.f32.mrf.mxu1 }
  0xa9 PF: > { %s13_s16 = sadd.s32 1, %s557_s16   ;;  %s686_s12 = smov %s549_s14 }
  0xaa   : > { %p10_p8 = scmp.ge.s32.totalorder %s13_s16, 10   ;;  %s687_s13 = smov %s553_s15 }
  0xab   : > { %s688_s14 = smov %s691_s0  ;;  %s689_s15 = smov %s695_s17 }
  0xac   :  { %12 = sbr.rel (!%p10_p8) target bundleno = 3 (0x3), region = 61 }

// kernel: _lambda_.2
= control target key start
LH: loop header
LB: loop body
LE: loop exit
PB: predicated region body
PF: predicated region fallthrough
CT: control target
= control target key end

     0   :  { %s910_s21 = smov 0   ;;  %s912_s22 = smov 0   ;;  %s1041_s0 = inlined_call_operand.vmem [shape: f32[2,8,256], index: 0, kind: input, shape index: {}]   ;;  %s1042_s1 = inlined_call_operand.vmem [shape: bf16[256,56], index: 1, kind: input, shape index: {}]   ;;  %s1043_s2 = inlined_call_operand.vmem [shape: f32[32,8], index: 2, kind: input, shape index: {}]   ;;  %s1044_s3 = inlined_call_operand.vmem [shape: f32[32,1], index: 3, kind: input, shape index: {}]   ;;  %s1045_s4 = inlined_call_operand.vmem [shape: f32[32,56], index: 4, kind: input, shape index: {}]   ;;  %s1046_s5 = inlined_call_operand.vmem [shape: f32[2,40,256], index: 5, kind: output, shape index: {0}]   ;;  %s1047_s6 = inlined_call_operand.vmem [shape: f32[2,32,56], index: 6, kind: output, shape index: {1}]  }
   0x1   :  { %s914_s23 = smov 0  }
   0x2 LB: > { %s29_s24 = sadd.s32 1, %s867_s22  ;;  %p726_p0 = scmp.ge.s32.totalorder %s871_s23, 1  ;;  %s871_s23 = sphi %s914_s23, %s17_s23   ;;  %s867_s22 = sphi %s912_s22, %s1049_s22   ;;  %s863_s21 = sphi %s910_s21, %s1048_s21  }
   0x3   : > { %p31_p1 = scmp.ge.s32.totalorder %s29_s24, 2  ;;  %p247_p2 = scmp.lt.s32.totalorder %s871_s23, 3 }
   0x5   : > { %s1051_s24 = smov (%p31_p1, %s29_s24), 0  ;;  %p248_p3 = pnand %p726_p0, %p247_p2 }
   0x6   : > { %p296_p4 = scmp.lt.s32.totalorder (!%p248_p3), %s863_s21, 1 }
   0x7   : > { %251 = sbr.rel (%p248_p3) target bundleno = 347 (0x15b), region = 40 }
   0xc   : > { %v811_v0 = vld [vmem:[%s1042_s1 + $0x38] sm:$0xff]  ;;  %v810_v2 = vld [vmem:[%s1042_s1 + $0x30] sm:$0xff]  ;;  %s1053_s21 = smov (!%p296_p4, %s863_s21), 1  ;;  %v809_v4 = vld [vmem:[%s1042_s1 + $0x28] sm:$0xff]  ;;  %vm330_vm0 = vcmask 457728   ;;  %v873_v20 = vmov 0.0  }
   0xd   : > { %v819_v1 = vld [vmem:[%s1042_s1 + $0x78] sm:$0xff]  ;;  %467 = vmatpush.bf16.msra.mxu0 %v811_v0  ;;  %v818_v3 = vld [vmem:[%s1042_s1 + $0x70] sm:$0xff]  ;;  %s802_s9 = sshll.u32 %s1053_s21, 4  ;;  %s820_s10 = smul.u32 80, %s1053_s21  ;;  %v817_v5 = vld [vmem:[%s1042_s1 + $0x68] sm:$0xff]  ;;  %331 = vst.msk [vmem:[#allocation2] sm:$0xff] %vm330_vm0, %v873_v20 }
   0xe   : > { %480 = vmatpush.bf16.msra.mxu1 %v819_v1  ;;  %s303_s13 = scalar_lea.vmem %s1041_s0, %s802_s9  ;;  %v808_v8 = vld [vmem:[%s1042_s1 + $0x20] sm:$0xff]  ;;  %v807_v10 = vld [vmem:[%s1042_s1 + $0x18] sm:$0xff]  ;;  %v806_v12 = vld [vmem:[%s1042_s1 + $0x10] sm:$0xff]  ;;  %v874_v21 = vmov 0   ;;  %vm528_vm1 = vcmask 64512   ;;  %s803_s17 = sshll.u32 %s1053_s21, 5 }
   0xf   : > { %s319_s20 = scalar_lea.vmem %s1046_s5, %s820_s10  ;;  %v332_v6 = vld [vmem:[%s303_s13] sm:$0xff]  ;;  %v333_v7 = vld [vmem:[%s303_s13 + $0x8] sm:$0xff]  ;;  %v815_v11 = vld [vmem:[%s1042_s1 + $0x58] sm:$0xff]  ;;  %847 = vset.pattern.permute.xlu0 %v874_v21  ;;  %848 = vset.pattern.permute.xlu1 %v874_v21  ;;  %s325_s26 = scalar_lea.vmem %s1047_s6, %s803_s17 }
  0x10   : > { %334 = vst [vmem:[%s319_s20] sm:$0xff] %v332_v6  ;;  %v816_v9 = vld [vmem:[%s1042_s1 + $0x60] sm:$0xff]  ;;  %v814_v13 = vld [vmem:[%s1042_s1 + $0x50] sm:$0xff]  ;;  %v805_v14 = vld [vmem:[%s1042_s1 + $0x8] sm:$0xff]  ;;  %v337_v18 = vpack.c.bf16 %v332_v6, %v332_v6  ;;  %v338_v19 = vpack.c.bf16 %v333_v7, %v333_v7 }
  0x11   : > { %468 = vmatpush.bf16.msra.mxu0 %v810_v2  ;;  %335 = vst [vmem:[%s319_s20 + $0x8] sm:$0xff] %v333_v7  ;;  %v813_v15 = vld [vmem:[%s1042_s1 + $0x48] sm:$0xff]  ;;  %v804_v16 = vld [vmem:[%s1042_s1] sm:$0xff]  ;;  %v506_v28 = vld [vmem:[%s1044_s3 + $0x10] sm:$0xff] }
  0x12   : > { %481 = vmatpush.bf16.msra.mxu1 %v818_v3  ;;  %v812_v17 = vld [vmem:[%s1042_s1 + $0x40] sm:$0xff]  ;;  %v505_v29 = vld [vmem:[%s1044_s3 + $0x8] sm:$0xff]  ;;  %520 = vperm.xlu1 %848, %v506_v28   ;;  %v507_v34 = vld [vmem:[%s1044_s3 + $0x18] sm:$0xff] }
  0x13   : > { %v504_v22 = vld [vmem:[%s1044_s3] sm:$0xff]  ;;  %v500_v35 = vld [vmem:[%s1043_s2 + $0x8] sm:$0xff]  ;;  %v501_v36 = vld [vmem:[%s1043_s2 + $0x10] sm:$0xff] }
  0x14   : > { %510 = vperm.xlu0 %847, %v504_v22   ;;  %v336_v24 = vld [vmem:[#allocation2] sm:$0xff]  ;;  %v502_v37 = vld [vmem:[%s1043_s2 + $0x18] sm:$0xff]  ;;  %v575_v47 = vld [vmem:[%s1045_s4 + $0x8] sm:$0xff] }
  0x15   : > { %469 = vmatpush.bf16.msra.mxu0 %v809_v4  ;;  %v499_v32 = vld [vmem:[%s1043_s2] sm:$0xff]  ;;  %v576_v53 = vld [vmem:[%s1045_s4 + $0x10] sm:$0xff]  ;;  %v577_v59 = vld [vmem:[%s1045_s4 + $0x18] sm:$0xff] }
  0x16   : > { %482 = vmatpush.bf16.msra.mxu1 %v817_v5  ;;  %v574_v41 = vld [vmem:[%s1045_s4] sm:$0xff] }
  0x19   : > { %470 = vmatpush.bf16.msra.mxu0 %v808_v8 }
  0x1a   : > { %483 = vmatpush.bf16.msra.mxu1 %v816_v9  ;;  %525 = vperm.xlu1 %848, %v507_v34  }
  0x1c   : > { %515 = vperm.xlu0 %847, %v505_v29  }
  0x1d   : > { %471 = vmatpush.bf16.msra.mxu0 %v807_v10 }
  0x1e   : > { %484 = vmatpush.bf16.msra.mxu1 %v815_v11 }
  0x21   : > { %472 = vmatpush.bf16.msra.mxu0 %v806_v12 }
  0x22   : > { %485 = vmatpush.bf16.msra.mxu1 %v814_v13 }
  0x25   : > { %473 = vmatpush.bf16.msra.mxu0 %v805_v14 }
  0x26   : > { %486 = vmatpush.bf16.msra.mxu1 %v813_v15 }
  0x29   : > { %474 = vmatpush.bf16.msra.mxu0 %v804_v16 }
  0x2a   : > { %487 = vmatpush.bf16.msra.mxu1 %v812_v17 }
  0x2c   : > { %475 = vmatmul.bf16.vlgmr.msra.gmra.mxu0 %v337_v18 }
  0x2d   : > { %488 = vmatmul.bf16.vlgmr.msra.gmra.mxu1 %v338_v19 }
  0x84   : > { %v521_v50 = vpop.permute.xlu1 %520 }
  0x86   : > { %v511_v38 = vpop.permute.xlu0 %510 }
  0x8c   : > { %v526_v56 = vpop.permute.xlu1 %525 }
  0x8e   : > { %v516_v44 = vpop.permute.xlu0 %515 }
  0xa9   : > { %v476_v23 = vpop.f32.mrf.mxu0 }
  0xaa   : > { %v489_v25 = vpop.f32.mrf.mxu1 }
  0xab   : > { %v490_v26 = vadd.f32 %v489_v25, %v476_v23 }
  0xad   : > { %v493_v27 = vadd.f32 %v490_v26, %v336_v24 }
  0xaf   : > { %495 = vst.msk [vmem:[#allocation2] sm:$0xff] %vm330_vm0, %v493_v27 }
  0xb1   : > { %v478_v30 = vpop.f32.mrf.mxu0 }
  0xb2   : > { %v491_v31 = vpop.f32.mrf.mxu1 }
  0xb6   : > { %v503_v33 = vld [vmem:[#allocation2] sm:$0xff] }
  0xb7   : > { %556 = vmatpush.msra.mxu2 %v503_v33 }
  0xb8   : > { %796 = vmatmul.msk.f32.vlgmr.msra.gmra.mxu2 %vm528_vm1, %v499_v32 }
  0xc0   : > { %797 = vmatmul.msk.f32.gmra.mxu2 %vm528_vm1, %v500_v35 }
  0xc8   : > { %798 = vmatmul.msk.f32.gmra.mxu2 %vm528_vm1, %v501_v36 }
  0xd0   : > { %799 = vmatmul.msk.f32.gmra.mxu2 %vm528_vm1, %v502_v37 }
 0x13b   : > { %v558_v39 = vpop.f32.mrf.mxu2 }
 0x13c   : > { %v559_v40 = vadd.f32 %v558_v39, %v511_v38 }
 0x13e   : > { %v570_v42 = vmax.f32 %v559_v40, 0.0 }
 0x140   : > { %v578_v43 = vmul.f32 %v574_v41, %v570_v42 }
 0x142   : > { %582 = vst.msk [vmem:[%s325_s26] sm:$0xff] %vm330_vm0, %v578_v43 }
 0x143   : > { %v561_v45 = vpop.f32.mrf.mxu2 }
 0x144   : > { %v562_v46 = vadd.f32 %v561_v45, %v516_v44 }
 0x146   : > { %v571_v48 = vmax.f32 %v562_v46, 0.0 }
 0x148   : > { %v579_v49 = vmul.f32 %v575_v47, %v571_v48 }
 0x14a   : > { %583 = vst.msk [vmem:[%s325_s26 + $0x8] sm:$0xff] %vm330_vm0, %v579_v49 }
 0x14b   : > { %v564_v51 = vpop.f32.mrf.mxu2 }
 0x14c   : > { %v565_v52 = vadd.f32 %v564_v51, %v521_v50 }
 0x14e   : > { %v572_v54 = vmax.f32 %v565_v52, 0.0 }
 0x150   : > { %v580_v55 = vmul.f32 %v576_v53, %v572_v54 }
 0x152   : > { %584 = vst.msk [vmem:[%s325_s26 + $0x10] sm:$0xff] %vm330_vm0, %v580_v55 }
 0x153   : > { %v567_v57 = vpop.f32.mrf.mxu2 }
 0x154   : > { %v568_v58 = vadd.f32 %v567_v57, %v526_v56 }
 0x156   : > { %v573_v60 = vmax.f32 %v568_v58, 0.0 }
 0x158   : > { %v581_v61 = vmul.f32 %v577_v59, %v573_v60 }
 0x15a   : > { %585 = vst.msk [vmem:[%s325_s26 + $0x18] sm:$0xff] %vm330_vm0, %v581_v61 }
 0x15b PF: > { %s17_s23 = sadd.s32 1, %s871_s23   ;;  %s1048_s21 = smov %s867_s22 }
 0x15c   : > { %p14_p5 = scmp.ge.s32.totalorder %s17_s23, 4   ;;  %s1049_s22 = smov %s1051_s24 }
 0x15e   :  { %16 = sbr.rel (!%p14_p5) target bundleno = 2 (0x2), region = 93 }

</bundles_post_ra>
